<compile_context>
chip_gen: v7x
topology: tpu7x:2x2x1
jax: 0.10.0
libtpu: 0.0.40
codegen_flags: <defaults>
</compile_context>

<pallas_src>
import functools

import jax
import jax.numpy as jnp
from jax.experimental import pallas as pl
from jax.experimental.pallas import tpu as pltpu


def _round_up(x, m):
    return (x + m - 1) // m * m


def _multi_hinge_kernel(logits_ref, classes_ref, out_ref, *, margin, p):
    # Load native dtype, upcast in-vreg (avoids a separate HBM cast pass).
    logits = logits_ref[...].astype(jnp.float32)          # (tn, C)
    cls = classes_ref[...]                                # (tn, 1) int32

    col = jax.lax.broadcasted_iota(jnp.int32, logits.shape, 1)
    is_true = col == cls                                  # (tn, C)

    # True-class logit via masked sum (exactly one True per row).
    true_logit = jnp.sum(jnp.where(is_true, logits, 0.0),
                         axis=-1, keepdims=True)          # (tn, 1)
    # Max over false classes: mask the true class to -inf, then reduce.
    false_max = jnp.max(jnp.where(is_true, -jnp.inf, logits),
                        axis=-1, keepdims=True)           # (tn, 1)

    loss = jnp.maximum(0.0, margin - true_logit + false_max)
    if p == 2:
        loss = loss * loss
    elif p != 1:
        loss = loss ** p

    # Lane-dense store: (tn, 1) sublane column -> (1, tn) lane row (XLU move,
    # avoids masked vst of a width-1 output block).
    out_ref[...] = loss.reshape(1, -1)


def _choose_tile_n(n, c, itemsize, vmem_budget_bytes=8 << 20):
    """Largest row tile (multiple of 8) whose double-buffered blocks fit the budget."""
    c_pad = max(_round_up(c, 128), 128)
    # Per row: 2x logits buffer (lane-padded) + 2x classes column (lane-padded to 128).
    bytes_per_row = 2 * (c_pad * itemsize + 128 * 4)
    tile = max(8, (vmem_budget_bytes // bytes_per_row) // 8 * 8)
    tile = min(tile, 2048)                 # diminishing returns past ~1-2k rows
    tile = min(tile, _round_up(n, 8))      # never exceed (padded) problem size
    return int(tile)


def multi_hinge_loss(logits, classes, *, margin=1.0, p=1, tile_n=None):
    """logits: [N, C], classes: [N] int -> per-sample hinge loss [N] float32."""
    N, C = logits.shape
    itemsize = jnp.dtype(logits.dtype).itemsize
    if tile_n is None:
        tile_n = _choose_tile_n(N, C, itemsize)
    tile_n = max(8, _round_up(tile_n, 8))

    n_pad = _round_up(N, tile_n)
    num_tiles = n_pad // tile_n

    if n_pad != N:
        # Tail handling: pad rows, slice the result back to N.
        logits = jnp.pad(logits, ((0, n_pad - N), (0, 0)))
        classes = jnp.pad(classes, ((0, n_pad - N),))
    classes2d = classes.reshape(n_pad, 1).astype(jnp.int32)

    kernel = functools.partial(_multi_hinge_kernel, margin=float(margin), p=p)

    cost = pl.CostEstimate(
        flops=3 * N * C,
        transcendentals=0,
        bytes_accessed=N * C * itemsize + N * 4 + N * 4,
    )

    out = pl.pallas_call(
        kernel,
        out_shape=jax.ShapeDtypeStruct((num_tiles, tile_n), jnp.float32),
        grid_spec=pltpu.PrefetchScalarGridSpec(
            num_scalar_prefetch=0,
            grid=(num_tiles,),
            in_specs=[
                pl.BlockSpec((tile_n, C), lambda i: (i, 0)),
                pl.BlockSpec((tile_n, 1), lambda i: (i, 0)),
            ],
            out_specs=pl.BlockSpec((1, tile_n), lambda i: (i, 0)),
        ),
        compiler_params=pltpu.CompilerParams(
            dimension_semantics=("parallel",),
            vmem_limit_bytes=32 << 20,
        ),
        cost_estimate=cost,
    )(logits, classes2d)

    return out.reshape(n_pad)[:N]


def _reference(logits, classes, margin=1.0, p=1):
    # Plain-JAX reference for a quick sanity check (compute in f32).
    logits = logits.astype(jnp.float32)
    N, C = logits.shape
    true_logit = jnp.take_along_axis(logits, classes[:, None], axis=-1)[:, 0]
    masked = jnp.where(jax.nn.one_hot(classes, C, dtype=bool), -jnp.inf, logits)
    false_max = jnp.max(masked, axis=-1)
    return jnp.maximum(0.0, margin - true_logit + false_max) ** p


if __name__ == "__main__":
    key = jax.random.PRNGKey(0)
    k1, k2, k3, k4 = jax.random.split(key, 4)

    margin = 1.0

    # Case 1: small f32 batch, p=1.
    N1, C1 = 16, 32
    logits1 = jax.random.normal(k1, (N1, C1), dtype=jnp.float32)
    classes1 = jax.random.randint(k2, (N1,), 0, C1, dtype=jnp.int32)
    loss1 = jax.block_until_ready(
        multi_hinge_loss(logits1, classes1, margin=margin, p=1))
    ref1 = _reference(logits1, classes1, margin=margin, p=1)
    assert loss1.shape == (N1,)
    assert jnp.allclose(loss1, ref1, atol=1e-5, rtol=1e-5), (loss1, ref1)

    # Case 2: bf16 logits, ragged N (exercises padding + in-kernel upcast), p=2.
    N2, C2 = 20, 32
    logits2 = jax.random.normal(k3, (N2, C2), dtype=jnp.bfloat16)
    classes2 = jax.random.randint(k4, (N2,), 0, C2, dtype=jnp.int32)
    loss2 = jax.block_until_ready(
        multi_hinge_loss(logits2, classes2, margin=margin, p=2))
    ref2 = _reference(logits2, classes2, margin=margin, p=2)
    assert loss2.shape == (N2,)
    assert jnp.allclose(loss2, ref2, atol=1e-4, rtol=1e-4), (loss2, ref2)

    print("KERNEL_OK")
</pallas_src>

<mosaic_0001>
module attributes {stable_mosaic.version = 11 : i64} {
  func.func @_multi_hinge_kernel(%arg0: i32, %arg1: memref<16x32xf32, #tpu.memory_space<vmem>>, %arg2: memref<16x1xi32, #tpu.memory_space<vmem>>, %arg3: memref<1x16xf32, #tpu.memory_space<vmem>>) attributes {dimension_semantics = [#tpu.dimension_semantics<parallel>], iteration_bounds = array<i64: 1>, scalar_prefetch = 0 : i64, scratch_operands = 0 : i64, tpu.core_type = #tpu.core_type<tc>, window_params = [{transform_indices = @transform_0, window_bounds = array<i64: 16, 32>}, {transform_indices = @transform_1, window_bounds = array<i64: 16, 1>}, {transform_indices = @transform_2, window_bounds = array<i64: 1, 16>}]} {
    %c0 = arith.constant 0 : index
    %c0_0 = arith.constant 0 : index
    %0 = vector.load %arg1[%c0, %c0_0] : memref<16x32xf32, #tpu.memory_space<vmem>>, vector<16x32xf32>
    %c0_1 = arith.constant 0 : index
    %c0_2 = arith.constant 0 : index
    %1 = vector.load %arg2[%c0_1, %c0_2] : memref<16x1xi32, #tpu.memory_space<vmem>>, vector<16x1xi32>
    %2 = tpu.iota {dimensions = array<i32: 1>} : vector<16x32xi32>
    %3 = vector.broadcast %1 : vector<16x1xi32> to vector<16x32xi32>
    %4 = arith.cmpi eq, %2, %3 : vector<16x32xi32>
    %cst = arith.constant 0.000000e+00 : f32
    %5 = vector.broadcast %cst : f32 to vector<16x32xf32>
    %6 = arith.select %4, %0, %5 : vector<16x32xi1>, vector<16x32xf32>
    %cst_3 = arith.constant dense<0.000000e+00> : vector<16xf32>
    %7 = vector.multi_reduction <add>, %6, %cst_3 [1] : vector<16x32xf32> to vector<16xf32>
    %8 = vector.shape_cast %7 : vector<16xf32> to vector<16x1xf32>
    %cst_4 = arith.constant 0xFF800000 : f32
    %9 = vector.broadcast %cst_4 : f32 to vector<16x32xf32>
    %10 = arith.select %4, %9, %0 : vector<16x32xi1>, vector<16x32xf32>
    %cst_5 = arith.constant dense<0xFF800000> : vector<16xf32>
    %11 = vector.multi_reduction <maximumf>, %10, %cst_5 [1] : vector<16x32xf32> to vector<16xf32>
    %12 = vector.shape_cast %11 : vector<16xf32> to vector<16x1xf32>
    %cst_6 = arith.constant 1.000000e+00 : f32
    %13 = vector.broadcast %cst_6 : f32 to vector<16x1xf32>
    %14 = arith.subf %13, %8 : vector<16x1xf32>
    %15 = arith.addf %14, %12 : vector<16x1xf32>
    %cst_7 = arith.constant 0.000000e+00 : f32
    %16 = vector.broadcast %cst_7 : f32 to vector<16x1xf32>
    %17 = arith.maximumf %16, %15 : vector<16x1xf32>
    %18 = vector.shape_cast %17 : vector<16x1xf32> to vector<1x16xf32>
    %c0_8 = arith.constant 0 : index
    %c0_9 = arith.constant 0 : index
    %19 = vector.load %arg3[%c0_8, %c0_9] : memref<1x16xf32, #tpu.memory_space<vmem>>, vector<1x16xf32>
    tpu.vector_store %arg3[%c0_8, %c0_9], %18 {strides = array<i32>} : memref<1x16xf32, #tpu.memory_space<vmem>>, vector<1x16xf32>,
    return
  }
  func.func @transform_0(%arg0: i32) -> (i32, i32) {
    %c0_i32 = arith.constant 0 : i32
    %c0_i32_0 = arith.constant 0 : i32
    return %arg0, %c0_i32 : i32, i32
  }
  func.func @transform_1(%arg0: i32) -> (i32, i32) {
    %c0_i32 = arith.constant 0 : i32
    %c0_i32_0 = arith.constant 0 : i32
    return %arg0, %c0_i32 : i32, i32
  }
  func.func @transform_2(%arg0: i32) -> (i32, i32) {
    %c0_i32 = arith.constant 0 : i32
    %c0_i32_0 = arith.constant 0 : i32
    return %arg0, %c0_i32 : i32, i32
  }
}

</mosaic_0001>

<bundles_post_ra>
// kernel: tpu_custom_call.1
= control target key start
LH: loop header
LB: loop body
LE: loop exit
PB: predicated region body
PF: predicated region fallthrough
CT: control target
= control target key end

     0   :  { %s147_s0 = inlined_call_operand.vmem [shape: f32[16,32], index: 0, kind: input, shape index: {}]   ;;  %s148_s1 = inlined_call_operand.vmem [shape: s32[16,1], index: 1, kind: input, shape index: {}]   ;;  %s149_s2 = inlined_call_operand.hbm [shape: f32[1,16], index: 2, kind: output, shape index: {}]  }
   0x1   :  { %v14_v0 = vld [vmem:[%s148_s1] sm:$0xff] }
   0x2   :  { %7 = vsyncpa [#allocation3], 0  ;;  %v106_v1 = vmov 0   ;;  %v15_v2 = vld [vmem:[%s148_s1 + $0x8] sm:$0xff]  ;;  %v16_v3 = vlaneseq  ;;  %v12_v5 = vld [vmem:[%s147_s0] sm:$0xff]  ;;  %vm28_vm0 = vcmask 261120  }
   0x3   :  { %81 = vset.pattern.permute.xlu0 %v106_v1  ;;  %v13_v11 = vld [vmem:[%s147_s0 + $0x8] sm:$0xff]  ;;  %s107_s0 = smov [#allocation2]   ;;  %vm60_vm3 = vcmask 130112   ;;  %vm63_vm4 = vcmask 122880  }
   0x4   :  { %19 = vperm.xlu0 %81, %v14_v0   ;;  %v17_v4 = vand.u32 127, %v16_v3  ;;  %v52_v21 = vshrl.u32 %v16_v3, 7  ;;  %s71_s1 = sshll.u32 %s107_s0, 4  ;;  %s72_s1 = int_to_ptr.vmem [resolvable:$true] %s71_s1 }
   0x5   :  { %s82_s17 = scalar_lea.vmem %s72_s1, 16  ;;  %s86_s18 = scalar_lea.vmem %s72_s1, 32 }
   0x6   :  { %v55_v23 = vadd.s32 4294967288, %v17_v4  ;;  %v53_v26 = vsub.s32 %v17_v4, %v52_v21  ;;  %p83_p0 = scmp.ne.s32.totalorder %s72_s1, %s82_s17  ;;  %p87_p1 = scmp.lt.s32.totalorder %s72_s1, %s72_s1 }
   0x7   :  { %p88_p2 = scmp.lt.s32.totalorder %s86_s18, %s82_s17 }
   0x8   :  { %22 = vperm.xlu0 %81, %v15_v2   ;;  %v58_v28 = vsub.s32 %v55_v23, %v52_v21 }
   0x9   :  { %p89_p3 = por %p88_p2, %p87_p1 }
   0xb   :  { %p90_p4 = pnand %p89_p3, %p83_p0 }
  0x83   :  { %v20_v6 = vpop.permute.xlu0 %19 }
  0x84   :  { %vm24_vm1 = vcmp.eq.s32.totalorder %v17_v4, %v20_v6 }
  0x85   :  { %v35_v7 = vsel %vm24_vm1, -inf, %v12_v5  ;;  %v26_v8 = vsel %vm24_vm1, %v12_v5, 0.0 }
  0x86   :  { %v37_v9 = vsel %vm28_vm0, %v35_v7, -inf  ;;  %v29_v10 = vsel %vm28_vm0, %v26_v8, 0.0 }
  0x87   :  { %v23_v12 = vpop.permute.xlu0 %22  ;;  %38 = vmax.xlane.f32.xlu0 %v37_v9  ;;  %30 = vadd.xlane.f32.xlu1 %v29_v10 }
  0x88   :  { %vm25_vm2 = vcmp.eq.s32.totalorder %v17_v4, %v23_v12 }
  0x89   :  { %v27_v13 = vsel %vm25_vm2, %v13_v11, 0.0  ;;  %v36_v15 = vsel %vm25_vm2, -inf, %v13_v11 }
  0x8a   :  { %v32_v14 = vsel %vm28_vm0, %v27_v13, 0.0  ;;  %v40_v16 = vsel %vm28_vm0, %v36_v15, -inf }
  0x8b   :  { %33 = vadd.xlane.f32.xlu1 %v32_v14 }
  0x8f   :  { %41 = vmax.xlane.f32.xlu1 %v40_v16 }
 0x114   :  { %v31_v17 = vpop.xlane.xlu1 %30  ;;  %v39_v19 = vpop.xlane.xlu0 %38 }
 0x115   :  { %v43_v18 = vsub.f32 1.0, %v31_v17 }
 0x117   :  { %v45_v22 = vadd.f32 %v43_v18, %v39_v19 }
 0x118   :  { %v34_v20 = vpop.xlane.xlu1 %33 }
 0x119   :  { %v44_v24 = vsub.f32 1.0, %v34_v20  ;;  %v47_v27 = vmax.f32 %v45_v22, 0.0 }
 0x11b   :  { %v54_v31 = vrot.slane %v47_v27, %v53_v26 }
 0x11c   :  { %v42_v25 = vpop.xlane.xlu1 %41 }
 0x11d   :  { %v46_v29 = vadd.f32 %v44_v24, %v42_v25 }
 0x11f   :  { %v48_v30 = vmax.f32 %v46_v29, 0.0 }
 0x121   :  { %v59_v32 = vrot.slane %v48_v30, %v58_v28 }
 0x123   :  { %v61_v33 = vsel %vm60_vm3, %v59_v32, %v54_v31 }
 0x124   :  { %64 = vst.msk [vmem:[#allocation2] sm:$0x1] %vm63_vm4, %v61_v33 }
 0x125   :  { %93 = shalt.err (!%p90_p4)
}
 0x126   :  { %s94_s21 = scalar_lea.hbm %s149_s2, 16 }
 0x127   :  { %p95_p5 = scmp.ne.s32.totalorder %s149_s2, %s94_s21  ;;  %p98_p6 = scmp.lt.u32.totalorder %s94_s21, %s149_s2 }
 0x129   :  { %p100_p7 = pnand %p98_p6, %p95_p5 }
 0x12b   :  { %103 = shalt.err (!%p100_p7)
}
 0x12c   :  { %74 = dma.vmem_to_hbm [thread:$0]  %s72_s1, 16, %s149_s2, [#allocation3]  }
 0x12d   :  { %104 = dma.done.wait [#allocation3], 16  }
 0x12e   :  { %105 = vsyncadd [#allocation3], 4294967280 }
 0x12f   :  { %78 = vsyncpa [#allocation3], 1 }

</bundles_post_ra>
